<compile_context>
chip_gen: v6e
topology: v6e:2x2x1
jax: 0.10.0
libtpu: 0.0.40
codegen_flags: <defaults>
</compile_context>

<pallas_src>
import functools
import math

import jax
import jax.numpy as jnp
import numpy as np
from jax import lax
from jax.experimental import pallas as pl
from jax.experimental.pallas import tpu as pltpu


# ----------------------------------------------------------------------------
# Positional encodings (batch-invariant, plain-JAX glue)
# ----------------------------------------------------------------------------
def conv_pe_grid(h: int, w: int) -> jnp.ndarray:
    """6-channel PE grid for ConvPEBlock: [y, x, sin(pi y), cos(pi y), sin(pi x), cos(pi x)]."""
    ys = jnp.linspace(-1.0, 1.0, h)
    xs = jnp.linspace(-1.0, 1.0, w)
    gy, gx = jnp.meshgrid(ys, xs, indexing="ij")
    pe = jnp.stack(
        [gy, gx,
         jnp.sin(math.pi * gy), jnp.cos(math.pi * gy),
         jnp.sin(math.pi * gx), jnp.cos(math.pi * gx)],
        axis=-1,
    )
    return pe.reshape(h * w, 6).astype(jnp.float32)


def sin_cos_enc2d(dim: int, h: int, w: int) -> jnp.ndarray:
    """Standard 2D sin/cos encoding: first dim/2 channels encode y, rest encode x."""
    assert dim % 4 == 0
    d_half = dim // 2

    def enc1d(pos, d):
        i = jnp.arange(d // 2, dtype=jnp.float32)
        freqs = jnp.exp(-math.log(10000.0) * (2.0 * i) / d)
        ang = pos[:, None] * freqs[None, :]
        return jnp.concatenate([jnp.sin(ang), jnp.cos(ang)], axis=-1)

    ey = enc1d(jnp.arange(h, dtype=jnp.float32), d_half)
    ex = enc1d(jnp.arange(w, dtype=jnp.float32), d_half)
    pe = jnp.concatenate(
        [jnp.broadcast_to(ey[:, None, :], (h, w, d_half)),
         jnp.broadcast_to(ex[None, :, :], (h, w, d_half))],
        axis=-1,
    )
    return pe.reshape(h * w, dim).astype(jnp.float32)


# ----------------------------------------------------------------------------
# Fused Pallas kernel: one grid step == one batch element
# ----------------------------------------------------------------------------
def _det_bev_kernel(num_heads, head_dim, hidden, approx_recip, compute_dtype,
                    x_ref, wkvt_ref, tbkv_ref,
                    q_ref, whead_ref, bhead_ref,
                    w2_ref, b2_ref, w3_ref, b3_ref,
                    cls_ref, box_ref):
    f32 = jnp.float32
    cdt = compute_dtype
    bnn = (((2,), (1,)), ((0,), (0,)))     # batched NN matmul over heads
    bnt = (((2,), (2,)), ((0,), (0,)))     # batched NT matmul over heads

    # Fused bev_project + kv_encoder: single stacked (2*dim, dim) matmul over the
    # channel-major tokens plus one precomputed (2*dim, N) token bias (PE conv,
    # conv biases and sin/cos encoding all folded in by the wrapper).
    x = x_ref[0]                                                         # (dim, N)
    n_tok = x.shape[-1]
    kv_t = jnp.dot(wkvt_ref[...], x, preferred_element_type=f32) + tbkv_ref[...]

    # Head-major regroup (2*dim, N) -> (2, H, head_dim, N).  Leading-axis split;
    # head_dim is a multiple of the f32 sublane tile (8) so it is layout-preserving.
    kv_h = kv_t.reshape(2, num_heads, head_dim, n_tok).astype(cdt)
    k_h = kv_h[0]                                                        # (H, hd, N)
    v_h = kv_h[1]

    # Multi-head cross attention, batched over heads (no per-head loop/concat).
    q = q_ref[...]                                                       # (H, nq, hd), pre-scaled
    s = lax.dot_general(q, k_h, bnn, preferred_element_type=f32)         # (H, nq, N)
    s = s - jnp.max(s, axis=-1, keepdims=True)
    p = jnp.exp(s)
    denom = jnp.sum(p, axis=-1, keepdims=True)
    o = lax.dot_general(p.astype(cdt), v_h, bnt, preferred_element_type=f32)  # (H, nq, hd)
    # Normalise after P@V: scales (H, nq, hd) instead of (H, nq, N).
    o = o * pl.reciprocal(denom, approx=approx_recip)

    # bbox-MLP layer 1 + class head fused into one weight [w1 | wc_pad]:
    # batched matmul over heads + leading-axis sum == concat(heads) @ W,
    # without materializing the head concat.
    part = lax.dot_general(o.astype(cdt), whead_ref[...], bnn,
                           preferred_element_type=f32)                   # (H, nq, hidden+128)
    acc = jnp.sum(part, axis=0) + bhead_ref[...]                         # (nq, hidden+128)

    cls_ref[0] = acc[:, hidden:]                                         # lane-dense padded classes

    h1 = jnp.maximum(acc[:, :hidden], 0.0)
    h2 = jnp.maximum(
        jnp.dot(h1.astype(cdt), w2_ref[...], preferred_element_type=f32) + b2_ref[...], 0.0)
    box_logits = jnp.dot(h2.astype(cdt), w3_ref[...], preferred_element_type=f32) + b3_ref[...]
    box_ref[0] = jax.nn.sigmoid(box_logits)                              # lane-dense padded boxes


# ----------------------------------------------------------------------------
# Wrapper
# ----------------------------------------------------------------------------
def det_bev_decoder(x, params, *, dim, num_queries, num_heads, num_classes,
                    hidden=128, compute_dtype=jnp.float32):
    """x: (BS, dim, H, W) NCHW float32.  Returns (classes (BS,nq,C+1), bboxes (BS,nq,9))."""
    BS, C, H, W = x.shape
    assert C == dim and dim % num_heads == 0
    head_dim = dim // num_heads
    assert head_dim % 8 == 0, "head_dim must be a multiple of the f32 sublane tile (8)"
    N = H * W
    ncls = num_classes + 1
    out_pad = 128
    assert ncls <= out_pad and 9 <= out_pad and hidden % 128 == 0
    f32 = jnp.float32
    cdt = compute_dtype

    # NCHW -> (BS, dim, N): pure reshape, no HBM transpose.  Channel-major tokens
    # are consumed directly by the fused KV projection.
    x_cn = x.reshape(BS, C, N).astype(cdt)

    # --- batch-invariant precomputation hoisted out of the kernel -------------
    # bev_project (1x1 conv over [pe6 ; x]) followed by +sin/cos enc and the
    # kv_encoder 1x1 conv is linear in x, so fold the whole chain:
    #   K = x @ (W_px @ W_k) + (token_bias @ W_k + b_k)   (and likewise for V)
    w_proj = params["w_proj"].astype(f32)                  # (6 + dim, dim)
    pe6 = conv_pe_grid(H, W)
    token_bias = pe6 @ w_proj[:6] + params["b_proj"].astype(f32) + sin_cos_enc2d(dim, H, W)
    w_px = w_proj[6:]                                      # (dim, dim)

    w_kv = params["w_kv"].astype(f32)                      # (dim, 2*dim)
    b_kv = params["b_kv"].astype(f32).reshape(1, 2 * dim)
    w_k, w_v = w_kv[:, :dim], w_kv[:, dim:]
    w_kvt = jnp.concatenate([(w_px @ w_k).T, (w_px @ w_v).T], axis=0).astype(cdt)   # (2*dim, dim)
    tb_k = token_bias @ w_k + b_kv[:, :dim]                # (N, dim)
    tb_v = token_bias @ w_v + b_kv[:, dim:]
    tb_kv_t = jnp.concatenate([tb_k.T, tb_v.T], axis=0)    # (2*dim, N) f32

    # Queries: head-major, pre-scaled by 1/sqrt(head_dim).
    q_h = (params["query_embed"].astype(f32)
           .reshape(num_queries, num_heads, head_dim)
           .transpose(1, 0, 2) * (1.0 / math.sqrt(head_dim))).astype(cdt)

    # bbox-MLP layer 1 + class head share one fused weight; class columns (and
    # the final bbox layer) are zero-padded to a full 128-lane tile so every
    # output store is an unmasked full-tile vst (wrapper slices afterwards).
    wc_pad = jnp.zeros((dim, out_pad), f32).at[:, :ncls].set(params["wc"].astype(f32))
    bc_pad = jnp.zeros((out_pad,), f32).at[:ncls].set(params["bc"].astype(f32).reshape(ncls))
    w_head = jnp.concatenate([params["w1"].astype(f32), wc_pad], axis=1)     # (dim, hidden+128)
    w_head_r = w_head.reshape(num_heads, head_dim, hidden + out_pad).astype(cdt)
    b_head = jnp.concatenate(
        [params["b1"].astype(f32).reshape(hidden), bc_pad]).reshape(1, hidden + out_pad)

    w2 = params["w2"].astype(cdt)
    b2 = params["b2"].astype(f32).reshape(1, hidden)
    w3_pad = jnp.zeros((hidden, out_pad), f32).at[:, :9].set(params["w3"].astype(f32)).astype(cdt)
    b3_pad = jnp.zeros((1, out_pad), f32).at[:, :9].set(params["b3"].astype(f32).reshape(1, 9))

    per_batch = lambda b: (b, 0, 0)
    shared2 = lambda b: (0, 0)
    shared3 = lambda b: (0, 0, 0)

    # Explicit VMEM budget: double-buffered blocks + slack for temporaries,
    # clamped to a level safe on every generation (v7x physical = 64 MiB/core).
    operand_blocks = [
        ((1, dim, N), cdt), ((2 * dim, dim), cdt), ((2 * dim, N), f32),
        ((num_heads, num_queries, head_dim), cdt),
        ((num_heads, head_dim, hidden + out_pad), cdt), ((1, hidden + out_pad), f32),
        ((hidden, hidden), cdt), ((1, hidden), f32),
        ((hidden, out_pad), cdt), ((1, out_pad), f32),
        ((1, num_queries, out_pad), f32), ((1, num_queries, out_pad), f32),
    ]
    block_bytes = sum(int(np.prod(s)) * jnp.dtype(d).itemsize for s, d in operand_blocks)
    vmem_limit = int(min(max(4 * block_bytes + (4 << 20), 8 << 20), 48 << 20))

    kernel = functools.partial(
        _det_bev_kernel, num_heads, head_dim, hidden,
        cdt != f32,          # approx reciprocal only on the reduced-precision path
        cdt)

    cls_pad, box_pad = pl.pallas_call(
        kernel,
        out_shape=(
            jax.ShapeDtypeStruct((BS, num_queries, out_pad), f32),
            jax.ShapeDtypeStruct((BS, num_queries, out_pad), f32),
        ),
        grid_spec=pltpu.PrefetchScalarGridSpec(
            num_scalar_prefetch=0,
            grid=(BS,),   # one batch element per step; >=2 parallel steps feed both v7x TCs
            in_specs=[
                pl.BlockSpec((1, dim, N), per_batch),                         # x_cn
                pl.BlockSpec((2 * dim, dim), shared2),                        # w_kvt
                pl.BlockSpec((2 * dim, N), shared2),                          # tb_kv_t
                pl.BlockSpec((num_heads, num_queries, head_dim), shared3),    # q_h
                pl.BlockSpec((num_heads, head_dim, hidden + out_pad), shared3),  # w_head_r
                pl.BlockSpec((1, hidden + out_pad), shared2),                 # b_head
                pl.BlockSpec((hidden, hidden), shared2),                      # w2
                pl.BlockSpec((1, hidden), shared2),                           # b2
                pl.BlockSpec((hidden, out_pad), shared2),                     # w3_pad
                pl.BlockSpec((1, out_pad), shared2),                          # b3_pad
            ],
            out_specs=[
                pl.BlockSpec((1, num_queries, out_pad), per_batch),
                pl.BlockSpec((1, num_queries, out_pad), per_batch),
            ],
        ),
        compiler_params=pltpu.CompilerParams(
            dimension_semantics=("parallel",),
            vmem_limit_bytes=vmem_limit),
    )(x_cn, w_kvt, tb_kv_t, q_h, w_head_r, b_head, w2, b2, w3_pad, b3_pad)

    return cls_pad[:, :, :ncls], box_pad[:, :, :9]


# ----------------------------------------------------------------------------
# Pure-JAX reference (same math, unfused) for self-check
# ----------------------------------------------------------------------------
def det_bev_decoder_ref(x, params, *, dim, num_queries, num_heads, num_classes):
    BS, C, H, W = x.shape
    N = H * W
    head_dim = dim // num_heads
    x_tok = jnp.transpose(x.reshape(BS, C, N), (0, 2, 1))
    pe6 = jnp.broadcast_to(conv_pe_grid(H, W)[None], (BS, N, 6))
    xpe = jnp.concatenate([pe6, x_tok], axis=-1)
    h = xpe @ params["w_proj"] + params["b_proj"]
    h = h + sin_cos_enc2d(dim, H, W)[None]
    kv = h @ params["w_kv"] + params["b_kv"]
    k, v = kv[..., :dim], kv[..., dim:]
    q = jnp.broadcast_to(params["query_embed"][None], (BS, num_queries, dim))
    qh = q.reshape(BS, num_queries, num_heads, head_dim).transpose(0, 2, 1, 3)
    kh = k.reshape(BS, N, num_heads, head_dim).transpose(0, 2, 1, 3)
    vh = v.reshape(BS, N, num_heads, head_dim).transpose(0, 2, 1, 3)
    s = jnp.einsum("bhqd,bhkd->bhqk", qh, kh) / math.sqrt(head_dim)
    p = jax.nn.softmax(s, axis=-1)
    o = jnp.einsum("bhqk,bhkd->bhqd", p, vh).transpose(0, 2, 1, 3).reshape(BS, num_queries, dim)
    h1 = jax.nn.relu(o @ params["w1"] + params["b1"])
    h2 = jax.nn.relu(h1 @ params["w2"] + params["b2"])
    bboxes = jax.nn.sigmoid(h2 @ params["w3"] + params["b3"])
    classes = o @ params["wc"] + params["bc"]
    return classes, bboxes


# ----------------------------------------------------------------------------
# Deterministic parameter init (PyTorch-like uniform fan-in init)
# ----------------------------------------------------------------------------
def init_params(key, dim, num_queries, num_classes, hidden=128):
    ks = jax.random.split(key, 12)

    def lin(k, fan_in, fan_out):
        kw, kb = jax.random.split(k)
        bound = 1.0 / math.sqrt(fan_in)
        w = jax.random.uniform(kw, (fan_in, fan_out), jnp.float32, -bound, bound)
        b = jax.random.uniform(kb, (1, fan_out), jnp.float32, -bound, bound)
        return w, b

    w_proj, b_proj = lin(ks[0], dim + 6, dim)
    w_kv, b_kv = lin(ks[1], dim, 2 * dim)
    w1, b1 = lin(ks[2], dim, hidden)
    w2, b2 = lin(ks[3], hidden, hidden)
    w3, b3 = lin(ks[4], hidden, 9)
    wc, bc = lin(ks[5], dim, num_classes + 1)
    query_embed = jax.random.normal(ks[6], (num_queries, dim), jnp.float32)
    return dict(w_proj=w_proj, b_proj=b_proj, w_kv=w_kv, b_kv=b_kv,
                w1=w1, b1=b1, w2=w2, b2=b2, w3=w3, b3=b3, wc=wc, bc=bc,
                query_embed=query_embed)


if __name__ == "__main__":
    BS = 2
    dim = 32
    Hb = Wb = 8               # bev_shape = (8, 8)
    num_queries = 16
    num_heads = 4             # head_dim = 8
    num_classes = 10

    key = jax.random.PRNGKey(0)
    kx, kp = jax.random.split(key)
    x = jax.random.normal(kx, (BS, dim, Hb, Wb), jnp.float32)
    params = init_params(kp, dim, num_queries, num_classes)

    cls_ref_v, box_ref_v = det_bev_decoder_ref(
        x, params, dim=dim, num_queries=num_queries,
        num_heads=num_heads, num_classes=num_classes)

    # f32 path: tight correctness check against the pure-JAX reference.
    classes, bboxes = jax.block_until_ready(
        det_bev_decoder(x, params, dim=dim, num_queries=num_queries,
                        num_heads=num_heads, num_classes=num_classes,
                        compute_dtype=jnp.float32))
    assert classes.shape == (BS, num_queries, num_classes + 1)
    assert bboxes.shape == (BS, num_queries, 9)
    np.testing.assert_allclose(np.asarray(classes), np.asarray(cls_ref_v), rtol=1e-4, atol=1e-4)
    np.testing.assert_allclose(np.asarray(bboxes), np.asarray(box_ref_v), rtol=1e-4, atol=1e-4)

    # bf16 MXU-operand path (torch.autocast-like): loose sanity check (reduced
    # mantissa + approx reciprocal; reference stays f32).
    classes_bf, bboxes_bf = jax.block_until_ready(
        det_bev_decoder(x, params, dim=dim, num_queries=num_queries,
                        num_heads=num_heads, num_classes=num_classes,
                        compute_dtype=jnp.bfloat16))
    np.testing.assert_allclose(np.asarray(classes_bf), np.asarray(cls_ref_v), rtol=1e-1, atol=1e-1)
    np.testing.assert_allclose(np.asarray(bboxes_bf), np.asarray(box_ref_v), rtol=1e-1, atol=1e-1)

    print("KERNEL_OK")
</pallas_src>

<mosaic_0001>
module attributes {stable_mosaic.version = 11 : i64} {
  func.func @_det_bev_kernel(%arg0: i32, %arg1: memref<1x32x64xf32, #tpu.memory_space<vmem>>, %arg2: memref<64x32xf32, #tpu.memory_space<vmem>>, %arg3: memref<64x64xf32, #tpu.memory_space<vmem>>, %arg4: memref<4x16x8xf32, #tpu.memory_space<vmem>>, %arg5: memref<4x8x256xf32, #tpu.memory_space<vmem>>, %arg6: memref<1x256xf32, #tpu.memory_space<vmem>>, %arg7: memref<128x128xf32, #tpu.memory_space<vmem>>, %arg8: memref<1x128xf32, #tpu.memory_space<vmem>>, %arg9: memref<128x128xf32, #tpu.memory_space<vmem>>, %arg10: memref<1x128xf32, #tpu.memory_space<vmem>>, %arg11: memref<1x16x128xf32, #tpu.memory_space<vmem>>, %arg12: memref<1x16x128xf32, #tpu.memory_space<vmem>>) attributes {dimension_semantics = [#tpu.dimension_semantics<parallel>], iteration_bounds = array<i64: 2>, scalar_prefetch = 0 : i64, scratch_operands = 0 : i64, tpu.core_type = #tpu.core_type<tc>, window_params = [{transform_indices = @transform_0, window_bounds = array<i64: 1, 32, 64>}, {pipeline_mode = #tpu.pipeline_mode<synchronous>, transform_indices = @transform_1, window_bounds = array<i64: 64, 32>}, {pipeline_mode = #tpu.pipeline_mode<synchronous>, transform_indices = @transform_2, window_bounds = array<i64: 64, 64>}, {pipeline_mode = #tpu.pipeline_mode<synchronous>, transform_indices = @transform_3, window_bounds = array<i64: 4, 16, 8>}, {pipeline_mode = #tpu.pipeline_mode<synchronous>, transform_indices = @transform_4, window_bounds = array<i64: 4, 8, 256>}, {pipeline_mode = #tpu.pipeline_mode<synchronous>, transform_indices = @transform_5, window_bounds = array<i64: 1, 256>}, {pipeline_mode = #tpu.pipeline_mode<synchronous>, transform_indices = @transform_6, window_bounds = array<i64: 128, 128>}, {pipeline_mode = #tpu.pipeline_mode<synchronous>, transform_indices = @transform_7, window_bounds = array<i64: 1, 128>}, {pipeline_mode = #tpu.pipeline_mode<synchronous>, transform_indices = @transform_8, window_bounds = array<i64: 128, 128>}, {pipeline_mode = #tpu.pipeline_mode<synchronous>, transform_indices = @transform_9, window_bounds = array<i64: 1, 128>}, {transform_indices = @transform_10, window_bounds = array<i64: 1, 16, 128>}, {transform_indices = @transform_11, window_bounds = array<i64: 1, 16, 128>}]} {
    %c0 = arith.constant 0 : index
    %c0_0 = arith.constant 0 : index
    %c0_1 = arith.constant 0 : index
    %0 = vector.load %arg1[%c0, %c0_0, %c0_1] : memref<1x32x64xf32, #tpu.memory_space<vmem>>, vector<1x32x64xf32>
    %1 = vector.shape_cast %0 : vector<1x32x64xf32> to vector<32x64xf32>
    %c0_2 = arith.constant 0 : index
    %c0_3 = arith.constant 0 : index
    %2 = vector.load %arg2[%c0_2, %c0_3] : memref<64x32xf32, #tpu.memory_space<vmem>>, vector<64x32xf32>
    %cst = arith.constant dense<0.000000e+00> : vector<64x64xf32>
    %3 = tpu.matmul %2, %1, %cst {dimension_numbers = #tpu.dot_dimension_numbers<[1], [0], [0], [1], [0, 0, 1, 1], [], []>} : vector<64x32xf32>, vector<32x64xf32>, vector<64x64xf32> -> vector<64x64xf32>
    %c0_4 = arith.constant 0 : index
    %c0_5 = arith.constant 0 : index
    %4 = vector.load %arg3[%c0_4, %c0_5] : memref<64x64xf32, #tpu.memory_space<vmem>>, vector<64x64xf32>
    %5 = arith.addf %3, %4 : vector<64x64xf32>
    %6 = vector.shape_cast %5 : vector<64x64xf32> to vector<2x4x8x64xf32>
    %7 = vector.extract_strided_slice %6 {offsets = [0, 0, 0, 0], sizes = [1, 4, 8, 64], strides = [1, 1, 1, 1]} : vector<2x4x8x64xf32> to vector<1x4x8x64xf32>
    %8 = vector.shape_cast %7 : vector<1x4x8x64xf32> to vector<4x8x64xf32>
    %9 = vector.extract_strided_slice %6 {offsets = [1, 0, 0, 0], sizes = [1, 4, 8, 64], strides = [1, 1, 1, 1]} : vector<2x4x8x64xf32> to vector<1x4x8x64xf32>
    %10 = vector.shape_cast %9 : vector<1x4x8x64xf32> to vector<4x8x64xf32>
    %c0_6 = arith.constant 0 : index
    %c0_7 = arith.constant 0 : index
    %c0_8 = arith.constant 0 : index
    %11 = vector.load %arg4[%c0_6, %c0_7, %c0_8] : memref<4x16x8xf32, #tpu.memory_space<vmem>>, vector<4x16x8xf32>
    %cst_9 = arith.constant dense<0.000000e+00> : vector<4x16x64xf32>
    %12 = tpu.matmul %11, %8, %cst_9 {dimension_numbers = #tpu.dot_dimension_numbers<[2], [1], [1], [2], [0, 0, 0, 1, 1, 2], [0], [0]>} : vector<4x16x8xf32>, vector<4x8x64xf32>, vector<4x16x64xf32> -> vector<4x16x64xf32>
    %cst_10 = arith.constant dense<0xFF800000> : vector<4x16xf32>
    %13 = vector.multi_reduction <maximumf>, %12, %cst_10 [2] : vector<4x16x64xf32> to vector<4x16xf32>
    %14 = vector.shape_cast %13 : vector<4x16xf32> to vector<4x16x1xf32>
    %15 = vector.broadcast %14 : vector<4x16x1xf32> to vector<4x16x64xf32>
    %16 = arith.subf %12, %15 : vector<4x16x64xf32>
    %17 = math.exp %16 : vector<4x16x64xf32>
    %cst_11 = arith.constant dense<0.000000e+00> : vector<4x16xf32>
    %18 = vector.multi_reduction <add>, %17, %cst_11 [2] : vector<4x16x64xf32> to vector<4x16xf32>
    %19 = vector.shape_cast %18 : vector<4x16xf32> to vector<4x16x1xf32>
    %cst_12 = arith.constant dense<0.000000e+00> : vector<4x16x8xf32>
    %20 = tpu.matmul %17, %10, %cst_12 {dimension_numbers = #tpu.dot_dimension_numbers<[2], [2], [1], [1], [0, 0, 0, 1, 1, 1], [0], [0]>} : vector<4x16x64xf32>, vector<4x8x64xf32>, vector<4x16x8xf32> -> vector<4x16x8xf32>
    %21 = tpu.reciprocal %19 : vector<4x16x1xf32> -> vector<4x16x1xf32>
    %22 = vector.broadcast %21 : vector<4x16x1xf32> to vector<4x16x8xf32>
    %23 = arith.mulf %20, %22 : vector<4x16x8xf32>
    %c0_13 = arith.constant 0 : index
    %c0_14 = arith.constant 0 : index
    %c0_15 = arith.constant 0 : index
    %24 = vector.load %arg5[%c0_13, %c0_14, %c0_15] : memref<4x8x256xf32, #tpu.memory_space<vmem>>, vector<4x8x256xf32>
    %cst_16 = arith.constant dense<0.000000e+00> : vector<4x16x256xf32>
    %25 = tpu.matmul %23, %24, %cst_16 {dimension_numbers = #tpu.dot_dimension_numbers<[2], [1], [1], [2], [0, 0, 0, 1, 1, 2], [0], [0]>} : vector<4x16x8xf32>, vector<4x8x256xf32>, vector<4x16x256xf32> -> vector<4x16x256xf32>
    %cst_17 = arith.constant dense<0.000000e+00> : vector<16x256xf32>
    %26 = vector.multi_reduction <add>, %25, %cst_17 [0] : vector<4x16x256xf32> to vector<16x256xf32>
    %c0_18 = arith.constant 0 : index
    %c0_19 = arith.constant 0 : index
    %27 = vector.load %arg6[%c0_18, %c0_19] : memref<1x256xf32, #tpu.memory_space<vmem>>, vector<1x256xf32>
    %28 = vector.broadcast %27 : vector<1x256xf32> to vector<16x256xf32>
    %29 = arith.addf %26, %28 : vector<16x256xf32>
    %30 = vector.extract_strided_slice %29 {offsets = [0, 128], sizes = [16, 128], strides = [1, 1]} : vector<16x256xf32> to vector<16x128xf32>
    %c0_20 = arith.constant 0 : index
    %c0_21 = arith.constant 0 : index
    %c0_22 = arith.constant 0 : index
    %31 = vector.load %arg11[%c0_20, %c0_21, %c0_22] : memref<1x16x128xf32, #tpu.memory_space<vmem>>, vector<1x16x128xf32>
    %32 = vector.shape_cast %31 : vector<1x16x128xf32> to vector<16x128xf32>
    %33 = vector.shape_cast %30 : vector<16x128xf32> to vector<1x16x128xf32>
    tpu.vector_store %arg11[%c0_20, %c0_21, %c0_22], %33 {strides = array<i32>} : memref<1x16x128xf32, #tpu.memory_space<vmem>>, vector<1x16x128xf32>,
    %34 = vector.extract_strided_slice %29 {offsets = [0, 0], sizes = [16, 128], strides = [1, 1]} : vector<16x256xf32> to vector<16x128xf32>
    %cst_23 = arith.constant 0.000000e+00 : f32
    %35 = vector.broadcast %cst_23 : f32 to vector<16x128xf32>
    %36 = arith.maximumf %34, %35 : vector<16x128xf32>
    %c0_24 = arith.constant 0 : index
    %c0_25 = arith.constant 0 : index
    %37 = vector.load %arg7[%c0_24, %c0_25] : memref<128x128xf32, #tpu.memory_space<vmem>>, vector<128x128xf32>
    %cst_26 = arith.constant dense<0.000000e+00> : vector<16x128xf32>
    %38 = tpu.matmul %36, %37, %cst_26 {dimension_numbers = #tpu.dot_dimension_numbers<[1], [0], [0], [1], [0, 0, 1, 1], [], []>} : vector<16x128xf32>, vector<128x128xf32>, vector<16x128xf32> -> vector<16x128xf32>
    %c0_27 = arith.constant 0 : index
    %c0_28 = arith.constant 0 : index
    %39 = vector.load %arg8[%c0_27, %c0_28] : memref<1x128xf32, #tpu.memory_space<vmem>>, vector<1x128xf32>
    %40 = vector.broadcast %39 : vector<1x128xf32> to vector<16x128xf32>
    %41 = arith.addf %38, %40 : vector<16x128xf32>
    %cst_29 = arith.constant 0.000000e+00 : f32
    %42 = vector.broadcast %cst_29 : f32 to vector<16x128xf32>
    %43 = arith.maximumf %41, %42 : vector<16x128xf32>
    %c0_30 = arith.constant 0 : index
    %c0_31 = arith.constant 0 : index
    %44 = vector.load %arg9[%c0_30, %c0_31] : memref<128x128xf32, #tpu.memory_space<vmem>>, vector<128x128xf32>
    %cst_32 = arith.constant dense<0.000000e+00> : vector<16x128xf32>
    %45 = tpu.matmul %43, %44, %cst_32 {dimension_numbers = #tpu.dot_dimension_numbers<[1], [0], [0], [1], [0, 0, 1, 1], [], []>} : vector<16x128xf32>, vector<128x128xf32>, vector<16x128xf32> -> vector<16x128xf32>
    %c0_33 = arith.constant 0 : index
    %c0_34 = arith.constant 0 : index
    %46 = vector.load %arg10[%c0_33, %c0_34] : memref<1x128xf32, #tpu.memory_space<vmem>>, vector<1x128xf32>
    %47 = vector.broadcast %46 : vector<1x128xf32> to vector<16x128xf32>
    %48 = arith.addf %45, %47 : vector<16x128xf32>
    %49 = arith.negf %48 : vector<16x128xf32>
    %50 = math.exp %49 : vector<16x128xf32>
    %cst_35 = arith.constant 1.000000e+00 : f32
    %51 = vector.broadcast %cst_35 : f32 to vector<16x128xf32>
    %52 = arith.addf %51, %50 : vector<16x128xf32>
    %53 = arith.divf %51, %52 : vector<16x128xf32>
    %c0_36 = arith.constant 0 : index
    %c0_37 = arith.constant 0 : index
    %c0_38 = arith.constant 0 : index
    %54 = vector.load %arg12[%c0_36, %c0_37, %c0_38] : memref<1x16x128xf32, #tpu.memory_space<vmem>>, vector<1x16x128xf32>
    %55 = vector.shape_cast %54 : vector<1x16x128xf32> to vector<16x128xf32>
    %56 = vector.shape_cast %53 : vector<16x128xf32> to vector<1x16x128xf32>
    tpu.vector_store %arg12[%c0_36, %c0_37, %c0_38], %56 {strides = array<i32>} : memref<1x16x128xf32, #tpu.memory_space<vmem>>, vector<1x16x128xf32>,
    return
  }
  func.func @transform_0(%arg0: i32) -> (i32, i32, i32) {
    %c0_i32 = arith.constant 0 : i32
    %c0_i32_0 = arith.constant 0 : i32
    %c0_i32_1 = arith.constant 0 : i32
    return %arg0, %c0_i32, %c0_i32_0 : i32, i32, i32
  }
  func.func @transform_1(%arg0: i32) -> (i32, i32) {
    %c0_i32 = arith.constant 0 : i32
    %c0_i32_0 = arith.constant 0 : i32
    %c0_i32_1 = arith.constant 0 : i32
    return %c0_i32, %c0_i32_0 : i32, i32
  }
  func.func @transform_2(%arg0: i32) -> (i32, i32) {
    %c0_i32 = arith.constant 0 : i32
    %c0_i32_0 = arith.constant 0 : i32
    %c0_i32_1 = arith.constant 0 : i32
    return %c0_i32, %c0_i32_0 : i32, i32
  }
  func.func @transform_3(%arg0: i32) -> (i32, i32, i32) {
    %c0_i32 = arith.constant 0 : i32
    %c0_i32_0 = arith.constant 0 : i32
    %c0_i32_1 = arith.constant 0 : i32
    %c0_i32_2 = arith.constant 0 : i32
    return %c0_i32, %c0_i32_0, %c0_i32_1 : i32, i32, i32
  }
  func.func @transform_4(%arg0: i32) -> (i32, i32, i32) {
    %c0_i32 = arith.constant 0 : i32
    %c0_i32_0 = arith.constant 0 : i32
    %c0_i32_1 = arith.constant 0 : i32
    %c0_i32_2 = arith.constant 0 : i32
    return %c0_i32, %c0_i32_0, %c0_i32_1 : i32, i32, i32
  }
  func.func @transform_5(%arg0: i32) -> (i32, i32) {
    %c0_i32 = arith.constant 0 : i32
    %c0_i32_0 = arith.constant 0 : i32
    %c0_i32_1 = arith.constant 0 : i32
    return %c0_i32, %c0_i32_0 : i32, i32
  }
  func.func @transform_6(%arg0: i32) -> (i32, i32) {
    %c0_i32 = arith.constant 0 : i32
    %c0_i32_0 = arith.constant 0 : i32
    %c0_i32_1 = arith.constant 0 : i32
    return %c0_i32, %c0_i32_0 : i32, i32
  }
  func.func @transform_7(%arg0: i32) -> (i32, i32) {
    %c0_i32 = arith.constant 0 : i32
    %c0_i32_0 = arith.constant 0 : i32
    %c0_i32_1 = arith.constant 0 : i32
    return %c0_i32, %c0_i32_0 : i32, i32
  }
  func.func @transform_8(%arg0: i32) -> (i32, i32) {
    %c0_i32 = arith.constant 0 : i32
    %c0_i32_0 = arith.constant 0 : i32
    %c0_i32_1 = arith.constant 0 : i32
    return %c0_i32, %c0_i32_0 : i32, i32
  }
  func.func @transform_9(%arg0: i32) -> (i32, i32) {
    %c0_i32 = arith.constant 0 : i32
    %c0_i32_0 = arith.constant 0 : i32
    %c0_i32_1 = arith.constant 0 : i32
    return %c0_i32, %c0_i32_0 : i32, i32
  }
  func.func @transform_10(%arg0: i32) -> (i32, i32, i32) {
    %c0_i32 = arith.constant 0 : i32
    %c0_i32_0 = arith.constant 0 : i32
    %c0_i32_1 = arith.constant 0 : i32
    return %arg0, %c0_i32, %c0_i32_0 : i32, i32, i32
  }
  func.func @transform_11(%arg0: i32) -> (i32, i32, i32) {
    %c0_i32 = arith.constant 0 : i32
    %c0_i32_0 = arith.constant 0 : i32
    %c0_i32_1 = arith.constant 0 : i32
    return %arg0, %c0_i32, %c0_i32_0 : i32, i32, i32
  }
}

</mosaic_0001>

<bundles_post_ra>
// kernel: tpu_custom_call.1
= control target key start
LH: loop header
LB: loop body
LE: loop exit
PB: predicated region body
PF: predicated region fallthrough
CT: control target
= control target key end

     0   :  { %17 = vsyncpa [#allocation3], 0  ;;  %s3101_s0 = inlined_call_operand.vmem [shape: f32[2,32,64], index: 0, kind: input, shape index: {}]   ;;  %s3102_s1 = inlined_call_operand.vmem [shape: f32[64,32], index: 1, kind: input, shape index: {}]   ;;  %s3103_s2 = inlined_call_operand.hbm [shape: f32[64,64], index: 2, kind: input, shape index: {}]   ;;  %s3104_s3 = inlined_call_operand.vmem [shape: f32[4,16,8], index: 3, kind: input, shape index: {}]   ;;  %s3105_s4 = inlined_call_operand.hbm [shape: f32[4,8,256], index: 4, kind: input, shape index: {}]   ;;  %s3106_s5 = inlined_call_operand.vmem [shape: f32[1,256], index: 5, kind: input, shape index: {}]   ;;  %s3107_s6 = inlined_call_operand.vmem [shape: f32[128,128], index: 6, kind: input, shape index: {}]   ;;  %s3108_s7 = inlined_call_operand.vmem [shape: f32[1,128], index: 7, kind: input, shape index: {}]   ;;  %s3109_s8 = inlined_call_operand.hbm [shape: f32[128,128], index: 8, kind: input, shape index: {}]   ;;  %s3110_s9 = inlined_call_operand.vmem [shape: f32[1,128], index: 9, kind: input, shape index: {}]   ;;  %s3111_s10 = inlined_call_operand.hbm [shape: f32[2,16,128], index: 10, kind: output, shape index: {0}]   ;;  %s3112_s11 = inlined_call_operand.hbm [shape: f32[2,16,128], index: 11, kind: output, shape index: {1}]  }
   0x1   :  { %18 = vsyncpa [#allocation6], 0 }
   0x2   :  { %19 = vsyncpa [#allocation4], 0 }
   0x3   :  { %21 = vsyncpa [#allocation4 + $0x1], 0 }
   0x4   :  { %22 = vsyncpa [#allocation10], 0 }
   0x5   :  { %24 = vsyncpa [#allocation10 + $0x1], 0  ;;  %s2731_s17 = smov 0   ;;  %s2733_s18 = smov 0  }
   0x6   :  { %s2735_s19 = smov 0   ;;  %s2737_s20 = smov 0  }
   0x7 LB: > { %3120 = sst [smem:[#allocation15_spill]] %s2653_s19  ;;  %s2752_s21 = sadd.s32 4294967295, %s2657_s20   ;;  %s2657_s20 = sphi %s2737_s20, %s3135_s20   ;;  %s2653_s19 = sphi %s2735_s19, %s3137_s19   ;;  %s2649_s18 = sphi %s2733_s18, %s3139_s18   ;;  %s2645_s17 = sphi %s2731_s17, %s3138_s17  }
   0x8   : > { %s2092_s22 = sadd.s32 4294967294, %s2657_s20   ;;  %s2756_s23 = sadd.s32 1, %s2657_s20  }
   0x9   : > { %3121 = sst [smem:[#allocation16_spill]] %s2756_s23  ;;  %s252_s24 = sadd.s32 1, %s2653_s19 }
   0xa   : > { %s249_s25 = ssub.s32 %s2657_s20, %s2756_s23  ;;  %p262_p0 = scmp.ne.s32.totalorder %s2653_s19, %s2649_s18 }
   0xb   : > { %p250_p1 = scmp.eq.s32.totalorder %s249_s25, 0  ;;  %p263_p2 = scmp.eq.s32.totalorder %s2752_s21, 1 }
   0xc   : > { %p268_p3 = scmp.ne.s32.totalorder %s2649_s18, %s2645_s17  ;;  %p269_p4 = scmp.eq.s32.totalorder %s2092_s22, 1 }
   0xd   : > { %s2767_s26 = scalar_select %p250_p1, %s2653_s19, %s252_s24  }
   0xe   : > { %p2769_p5 = por %p263_p2, %p262_p0  ;;  %p2773_p6 = por %p269_p4, %p268_p3 }
   0xf   : > { %3122 = sst [smem:[#allocation17_spill]] %s2767_s26  ;;  %p2093_p7 = scmp.ge.s32.totalorder %s2657_s20, 1 }
  0x10   : > { %s3124_s28 = scalar_select %p2773_p6, 1, 0 }
  0x11   : > { %p302_p8 = scmp.lt.s32.totalorder %s2657_s20, 3  ;;  %p3113_p9 = scmp.eq.s32.totalorder %s2752_s21, 0 }
  0x12   : > { %s2659_s30 = smov [#allocation5]   ;;  %s2660_s14 = smov [#allocation2]  }
  0x13   : > { %p2780_p10 = pnand %p2093_p7, %p302_p8  ;;  %s333_s12 = sshll.u32 %s2659_s30, 4  ;;  %s334_s12 = int_to_ptr.vmem [resolvable:$true] %s333_s12 }
  0x14   : > { %s317_s15 = sshll.u32 %s2660_s14, 4  ;;  %s2492_s16 = scalar_lea.vmem %s334_s12, 1024  ;;  %s318_s15 = int_to_ptr.vmem [resolvable:$true] %s317_s15 }
  0x15   : > { %p2375_p11 = pneg %p2780_p10  ;;  %p2493_p0 = scmp.ne.s32.totalorder %s334_s12, %s2492_s16 }
  0x16   : > { %p2500_p3 = scmp.lt.s32.totalorder %s334_s12, %s334_s12  ;;  %p2501_p4 = scmp.lt.s32.totalorder %s2492_s16, %s2492_s16 }
  0x17   : > { %p2788_p12 = pnand %p3113_p9, %p2375_p11 }
  0x18   : > { %p2502_p7 = por %p2501_p4, %p2500_p3 }
  0x19   : > { %p2483_p13 = pneg %p2788_p12 }
  0x1b   : > { %p2495_p1 = pnand %p2493_p0, %p2483_p13 }
  0x1d   : > { %p2496_p2 = pneg %p2495_p1 }
  0x1f   : > { %p2503_p8 = pnand %p2502_p7, %p2496_p2 }
  0x21   : > { %2506 = shalt.err (!%p2503_p8)
}
  0x22   : > { %s2661_s22 = smov 256   ;;  %s2662_s24 = smov 16  }
  0x23   : > { %2381 = dma.hbm_to_vmem [thread:$0]  (!%p2788_p12), %s3105_s4, 1024, %s334_s12, [#allocation6], %s2661_s22, %s2661_s22, %s2662_s24  }
  0x24   : > { %s2518_s14 = scalar_lea.vmem %s318_s15, 1024  ;;  %p2526_p9 = scmp.lt.s32.totalorder %s318_s15, %s318_s15 }
  0x25   : > { %p2519_p11 = scmp.ne.s32.totalorder %s318_s15, %s2518_s14  ;;  %p2527_p6 = scmp.lt.s32.totalorder %s2518_s14, %s2518_s14 }
  0x27   : > { %p2521_p0 = pnand %p2519_p11, %p2483_p13  ;;  %p2528_p3 = por %p2527_p6, %p2526_p9 }
  0x29   : > { %p2522_p1 = pneg %p2521_p0 }
  0x2b   : > { %p2529_p2 = pnand %p2528_p3, %p2522_p1 }
  0x2d   : > { %2532 = shalt.err (!%p2529_p2)
}
  0x2e   : > { %s2663_s16 = smov 128   ;;  %s2664_s26 = smov 8  }
  0x2f   : > { %2378 = dma.hbm_to_vmem [thread:$0]  (!%p2788_p12), %s3103_s2, 1024, %s318_s15, [#allocation3], %s2663_s16, %s2663_s16, %s2664_s26  }
  0x30   : > { %s2665_s12 = smov [#allocation7]  }
  0x31   : > { %s355_s22 = sshll.u32 %s2665_s12, 4  ;;  %s356_s22 = int_to_ptr.vmem [resolvable:$true] %s355_s22 }
  0x32   : > { %s2544_s24 = scalar_lea.vmem %s356_s22, 2048  ;;  %p2552_p9 = scmp.lt.s32.totalorder %s356_s22, %s356_s22 }
  0x33   : > { %p2545_p4 = scmp.ne.s32.totalorder %s356_s22, %s2544_s24  ;;  %p2553_p8 = scmp.lt.s32.totalorder %s2544_s24, %s2544_s24 }
  0x35   : > { %p2547_p7 = pnand %p2545_p4, %p2483_p13  ;;  %p2554_p11 = por %p2553_p8, %p2552_p9 }
  0x37   : > { %p2548_p6 = pneg %p2547_p7 }
  0x39   : > { %p2555_p0 = pnand %p2554_p11, %p2548_p6 }
  0x3b   : > { %2558 = shalt.err (!%p2555_p0)
}
  0x3c   : > { %2384 = dma.hbm_to_vmem [thread:$0]  (!%p2788_p12), %s3109_s8, 2048, %s356_s22, [#allocation6], %s2663_s16, %s2663_s16, %s2664_s26  }
  0x3d   : > { %382 = sbr.rel (%p2780_p10) target bundleno = 1495 (0x5d7), region = 60  ;;  %p3127_p1 = scmp.eq.s32.totalorder (!%p2780_p10), %s2752_s21, 0 }
  0x42   : > { %2628 = dma.done.wait (%p3127_p1), [#allocation3], 1024   ;;  %p3128_p13 = pmov %p3127_p1 }
  0x43   : > { %p3129_p3 = pmov %p3127_p1 }
  0x44   : > { %2630 = vsyncadd (%p3128_p13), [#allocation3], 4294966272 }
  0x45   : > { %2632 = dma.done.wait (%p3129_p3), [#allocation6], 3072   ;;  %p3130_p2 = pmov %p3127_p1 }
  0x46   : > { %p435_p4 = scmp.lt.s32.totalorder %s2752_s21, 1  ;;  %vm460_vm0 = vcmask 261120   ;;  %v444_v2 = vld [vmem:[%s3102_s1] sm:$0xff]  ;;  %v445_v5 = vld [vmem:[%s3102_s1 + $0x8] sm:$0xff]  ;;  %v446_v6 = vld [vmem:[%s3102_s1 + $0x10] sm:$0xff]  ;;  %vm598_vm1 = vcmask 64512  }
  0x47   : > { %2634 = vsyncadd (%p3130_p2), [#allocation6], 4294964224  ;;  %2237 = vmatprep.mubr.msk.f32.mxu0 %vm460_vm0, %v444_v2  ;;  %v447_v7 = vld [vmem:[%s3102_s1 + $0x18] sm:$0xff]  ;;  %v590_v8 = vld [vmem:[%s3104_s3] sm:$0xff]  ;;  %vm923_vm2 = vcmask 523264   ;;  %s2997_s14 = sand.u32 1, %s2649_s18  }
  0x48   : > { %s436_s19 = scalar_select %p435_p4, %s2752_s21, 1  ;;  %2251 = vmatprep.mubr.msk.f32.mxu1 %vm598_vm1, %v590_v8  ;;  %v448_v9 = vld [vmem:[%s3102_s1 + $0x20] sm:$0xff]  ;;  %v449_v10 = vld [vmem:[%s3102_s1 + $0x28] sm:$0xff]  ;;  %v450_v11 = vld [vmem:[%s3102_s1 + $0x30] sm:$0xff] }
  0x49   : > { %v451_v12 = vld [vmem:[%s3102_s1 + $0x38] sm:$0xff]  ;;  %v452_v14 = vld [vmem:[#allocation2] sm:$0xff]  ;;  %v453_v15 = vld [vmem:[#allocation2 + $0x8] sm:$0xff]  ;;  %s3118_s16 = sshll.u32 %s2997_s14, 4  ;;  %s3117_s30 = sshll.u32 %s2752_s21, 8 }
  0x4a   : > { %s2154_s23 = sshll.u32 %s436_s19, 5  ;;  %v454_v19 = vld [vmem:[#allocation2 + $0x10] sm:$0xff]  ;;  %v591_v20 = vld [vmem:[%s3104_s3 + $0x8] sm:$0xff]  ;;  %v455_v23 = vld [vmem:[#allocation2 + $0x18] sm:$0xff]  ;;  %s3002_s12 = scalar_lea.vmem [#allocation8], %s3118_s16 }
  0x4b   : > { %s439_s13 = scalar_lea.vmem %s3101_s0, %s2154_s23  ;;  %v592_v22 = vld [vmem:[%s3104_s3 + $0x10] sm:$0xff]  ;;  %v593_v26 = vld [vmem:[%s3104_s3 + $0x18] sm:$0xff]  ;;  %v594_v28 = vld [vmem:[%s3104_s3 + $0x20] sm:$0xff]  ;;  %s1951_s25 = sshll.u32 %s3002_s12, 4  ;;  %s3010_s25 = int_to_ptr.vmem [resolvable:$true] %s1951_s25 }
  0x4c   : > { %v443_v0 = vld [vmem:[%s439_s13 + $0x18] sm:$0xff]  ;;  %v442_v1 = vld [vmem:[%s439_s13 + $0x10] sm:$0xff]  ;;  %v441_v3 = vld [vmem:[%s439_s13 + $0x8] sm:$0xff]  ;;  %s3018_s26 = scalar_lea.hbm %s3111_s10, %s3117_s30  ;;  %s1933_s29 = scalar_lea.sflag [#allocation4], %s2997_s14 }
  0x4d   : > { %2229 = vmatprep.subr.mxu0 %v443_v0  ;;  %v440_v4 = vld [vmem:[%s439_s13] sm:$0xff]  ;;  %v595_v29 = vld [vmem:[%s3104_s3 + $0x28] sm:$0xff]  ;;  %v596_v30 = vld [vmem:[%s3104_s3 + $0x30] sm:$0xff]  ;;  %s2559_s13 = scalar_lea.vmem %s3010_s25, 256  ;;  %s2667_s15 = smov [#allocation8]  }
  0x4e   : > { %2230 = vmatpush3.msra.mxu0 %v443_v0  ;;  %v597_v31 = vld [vmem:[%s3104_s3 + $0x38] sm:$0xff]  ;;  %v457_v49 = vld [vmem:[#allocation2 + $0x28] sm:$0xff]  ;;  %v456_v51 = vld [vmem:[#allocation2 + $0x20] sm:$0xff]  ;;  %p2560_p10 = scmp.ne.s32.totalorder %s3010_s25, %s2559_s13 }
  0x4f   : > { %2231 = vmatprep.subr.mxu0 %v442_v1  ;;  %v458_v55 = vld [vmem:[#allocation2 + $0x30] sm:$0xff] }
  0x50   : > { %2232 = vmatpush3.msra.mxu0 %v442_v1  ;;  %p2561_p12 = pnand %p2560_p10, %p2769_p5 }
  0x51   : > { %2233 = vmatprep.subr.mxu0 %v441_v3 }
  0x52   : > { %2234 = vmatpush3.msra.mxu0 %v441_v3  ;;  %p2562_p7 = pneg %p2561_p12 }
  0x53   : > { %2235 = vmatprep.subr.mxu0 %v440_v4 }
  0x54   : > { %2236 = vmatpush3.msra.mxu0 %v440_v4 }
  0x55   : > { %2238 = vmatmul.mubr.msk.f32.vlgmr.msra.gmra.mxu0 %vm460_vm0, %v445_v5 }
  0x56   : > { %2240 = vmatprep.mubr.msk.f32.mxu0 %vm460_vm0, %v446_v6 }
  0x59   : > { %2241 = vmatmul.mubr.msk.f32.gmra.mxu0 %vm460_vm0, %v447_v7 }
  0x5a   : > { %2243 = vmatprep.mubr.msk.f32.mxu0 %vm460_vm0, %v448_v9 }
  0x5d   : > { %2244 = vmatmul.mubr.msk.f32.gmra.mxu0 %vm460_vm0, %v449_v10 }
  0x5e   : > { %2246 = vmatprep.mubr.msk.f32.mxu0 %vm460_vm0, %v450_v11 }
  0x61   : > { %2247 = vmatmul.mubr.msk.f32.gmra.mxu0 %vm460_vm0, %v451_v12 }
 0x115   : > { %v2239_v13 = vpop.f32.mrf.mxu0 }
 0x116   : > { %v557_v21 = vadd.f32 %v2239_v13, %v453_v15 }
 0x117   : > { %v551_v16 = vpop.f32.mrf.mxu0 }
 0x118   : > { %v552_v17 = vadd.f32 %v551_v16, %v452_v14 }
 0x119   : > { %v2242_v18 = vpop.f32.mrf.mxu0 }
 0x11a   : > { %2249 = vmatprep.subr.mxu1 %v552_v17  ;;  %v567_v27 = vadd.f32 %v2242_v18, %v455_v23  ;;  %v459_v18 = vld [vmem:[#allocation2 + $0x38] sm:$0xff] }
 0x11b   : > { %2250 = vmatpush3.msra.mxu1 %v552_v17  ;;  %v561_v24 = vpop.f32.mrf.mxu0 }
 0x11c   : > { %v562_v25 = vadd.f32 %v561_v24, %v454_v19  ;;  %2252 = vmatmul.mubr.msk.f32.vlgmr.msra.gmra.mxu1 %vm598_vm1, %v591_v20  ;;  %2254 = vmatprep.subr.mxu1 %v557_v21 }
 0x11d   : > { %2255 = vmatpush3.msra.mxu1 %v557_v21  ;;  %2256 = vmatprep.mubr.msk.f32.mxu1 %vm598_vm1, %v592_v22  ;;  %v2245_v48 = vpop.f32.mrf.mxu0 }
 0x11e   : > { %2259 = vmatprep.subr.mxu1 %v562_v25  ;;  %v577_v52 = vadd.f32 %v2245_v48, %v457_v49 }
 0x11f   : > { %v571_v50 = vpop.f32.mrf.mxu0 }
 0x120   : > { %2257 = vmatmul.mubr.msk.f32.vlgmr.msra.gmra.mxu1 %vm598_vm1, %v593_v26  ;;  %v572_v53 = vadd.f32 %v571_v50, %v456_v51 }
 0x121   : > { %2260 = vmatpush3.msra.mxu1 %v562_v25  ;;  %2261 = vmatprep.mubr.msk.f32.mxu1 %vm598_vm1, %v594_v28  ;;  %v2248_v54 = vpop.f32.mrf.mxu0 }
 0x122   : > { %2264 = vmatprep.subr.mxu1 %v567_v27  ;;  %v587_v21 = vadd.f32 %v2248_v54, %v459_v18  ;;  %v1730_v18 = vld [vmem:[%s3107_s6 + $0x50] sm:$0xff] }
 0x123   : > { %v581_v56 = vpop.f32.mrf.mxu0 }
 0x124   : > { %2262 = vmatmul.mubr.msk.f32.vlgmr.msra.gmra.mxu1 %vm598_vm1, %v595_v29  ;;  %v582_v57 = vadd.f32 %v581_v56, %v458_v55  ;;  %v1352_v55 = vld [vmem:[#allocation5 + $0x20] sm:$0xff] }
 0x125   : > { %2265 = vmatpush3.msra.mxu1 %v567_v27  ;;  %2266 = vmatprep.mubr.msk.f32.mxu1 %vm598_vm1, %v596_v30 }
 0x126   : > { %2269 = vmatprep.subr.msk.mxu1 %vm923_vm2, %v572_v53  ;;  %2279 = vmatprep.subr.msk.mxu0 %vm923_vm2, %v582_v57 }
 0x127   : > { %2280 = vmatpush3.xpose.msk.msra.mxu0 %vm923_vm2, %v582_v57  ;;  %v1735_v57 = vld [vmem:[%s3107_s6 + $0x78] sm:$0xff] }
 0x128   : > { %2267 = vmatmul.mubr.msk.f32.vlgmr.msra.gmra.mxu1 %vm598_vm1, %v597_v31 }
 0x129   : > { %2270 = vmatpush3.xpose.msk.msra.mxu1 %vm923_vm2, %v572_v53 }
 0x12a   : > { %2274 = vmatprep.subr.msk.mxu1 %vm923_vm2, %v577_v52 }
 0x1dc   : > { %v2253_v32 = vpop.f32.mrf.mxu1 }
 0x1dd   : > { %v927_v37 = vsel %vm923_vm2, %v2253_v32, -inf }
 0x1de   : > { %v671_v33 = vpop.f32.mrf.mxu1 }
 0x1df   : > { %v924_v34 = vsel %vm923_vm2, %v671_v33, -inf }
 0x1e0   : > { %925 = vmax.xlane.f32.xlu0 %v924_v34  ;;  %v2258_v35 = vpop.f32.mrf.mxu1 }
 0x1e1   : > { %v933_v41 = vsel %vm923_vm2, %v2258_v35, -inf }
 0x1e2   : > { %v752_v36 = vpop.f32.mrf.mxu1 }
 0x1e3   : > { %v930_v38 = vsel %vm923_vm2, %v752_v36, -inf }
 0x1e4   : > { %928 = vmax.xlane.f32.xlu0 %v927_v37  ;;  %931 = vmax.xlane.f32.xlu1 %v930_v38  ;;  %v2263_v39 = vpop.f32.mrf.mxu1  ;;  %v1348_v37 = vld [vmem:[#allocation5] sm:$0xff]  ;;  %v1351_v38 = vld [vmem:[#allocation5 + $0x18] sm:$0xff] }
 0x1e5   : > { %v939_v45 = vsel %vm923_vm2, %v2263_v39, -inf }
 0x1e6   : > { %v833_v40 = vpop.f32.mrf.mxu1 }
 0x1e7   : > { %v936_v42 = vsel %vm923_vm2, %v833_v40, -inf }
 0x1e8   : > { %934 = vmax.xlane.f32.xlu1 %v933_v41  ;;  %937 = vmax.xlane.f32.xlu0 %v936_v42  ;;  %v2268_v43 = vpop.f32.mrf.mxu1  ;;  %v1353_v41 = vld [vmem:[#allocation5 + $0x28] sm:$0xff]  ;;  %v1355_v42 = vld [vmem:[#allocation5 + $0x38] sm:$0xff] }
 0x1e9   : > { %v945_v47 = vsel %vm923_vm2, %v2268_v43, -inf }
 0x1ea   : > { %v914_v44 = vpop.f32.mrf.mxu1 }
 0x1eb   : > { %v942_v46 = vsel %vm923_vm2, %v914_v44, -inf }
 0x1ec   : > { %940 = vmax.xlane.f32.xlu1 %v939_v45  ;;  %943 = vmax.xlane.f32.xlu0 %v942_v46 }
 0x1f0   : > { %946 = vmax.xlane.f32.xlu1 %v945_v47 }
 0x269   : > { %v926_v58 = vpop.xlane.xlu0 %925 }
 0x26a   : > { %v948_v59 = vsub.f32 %v671_v33, %v926_v58 }
 0x26c   : > { %v956_v60 = vmul.f32 1.442695, %v948_v59 }
 0x26d   : > { %v929_v61 = vpop.xlane.xlu0 %928  ;;  %v932_v62 = vpop.xlane.xlu1 %931 }
 0x26e   : > { %2441 = vpow2.f32 %v956_v60  ;;  %v949_v63 = vsub.f32 %v2253_v32, %v929_v61  ;;  %v950_v0 = vsub.f32 %v752_v36, %v932_v62  ;;  %v1349_v36 = vld [vmem:[#allocation5 + $0x8] sm:$0xff] }
 0x26f   : > { %1392 = vmatprep.subr.mxu0 %v1349_v36  ;;  %v1828_v36 = vld [vmem:[#allocation7 + $0x40] sm:$0xff] }
 0x270   : > { %v958_v1 = vmul.f32 1.442695, %v949_v63  ;;  %v960_v2 = vmul.f32 1.442695, %v950_v0  ;;  %v1354_v63 = vld [vmem:[#allocation5 + $0x30] sm:$0xff] }
 0x271   : > { %v935_v3 = vpop.xlane.xlu1 %934  ;;  %v938_v4 = vpop.xlane.xlu0 %937 }
 0x272   : > { %2443 = vpow2.f32 %v958_v1  ;;  %v951_v5 = vsub.f32 %v2258_v35, %v935_v3  ;;  %v952_v6 = vsub.f32 %v833_v40, %v938_v4  ;;  %v1350_v40 = vld [vmem:[#allocation5 + $0x10] sm:$0xff] }
 0x273   : > { %2445 = vpow2.f32 %v960_v2 }
 0x274   : > { %v962_v7 = vmul.f32 1.442695, %v951_v5  ;;  %v964_v8 = vmul.f32 1.442695, %v952_v6 }
 0x275   : > { %v941_v9 = vpop.xlane.xlu1 %940  ;;  %v944_v10 = vpop.xlane.xlu0 %943 }
 0x276   : > { %2447 = vpow2.f32 %v962_v7  ;;  %v953_v11 = vsub.f32 %v2263_v39, %v941_v9  ;;  %v954_v12 = vsub.f32 %v914_v44, %v944_v10  ;;  %v2666_v39 = vmov 0.0  }
 0x277   : > { %2449 = vpow2.f32 %v964_v8  ;;  %v1734_v8 = vld [vmem:[%s3107_s6 + $0x70] sm:$0xff] }
 0x278   : > { %v966_v13 = vmul.f32 1.442695, %v953_v11  ;;  %v968_v14 = vmul.f32 1.442695, %v954_v12 }
 0x279   : > { %v947_v15 = vpop.xlane.xlu1 %946 }
 0x27a   : > { %2451 = vpow2.f32 %v966_v13  ;;  %v955_v16 = vsub.f32 %v2268_v43, %v947_v15  ;;  %v1733_v13 = vld [vmem:[%s3107_s6 + $0x68] sm:$0xff]  ;;  %v1732_v15 = vld [vmem:[%s3107_s6 + $0x60] sm:$0xff] }
 0x27b   : > { %v2442_v17 = vpop.eup %2441  ;;  %2453 = vpow2.f32 %v968_v14 }
 0x27c   : > { %v970_v19 = vmul.f32 1.442695, %v955_v16  ;;  %2271 = vmatprep.mubr.msk.f32.mxu1 %vm923_vm2, %v2442_v17  ;;  %v972_v20 = vsel %vm923_vm2, %v2442_v17, 0.0  ;;  %v1731_v17 = vld [vmem:[%s3107_s6 + $0x58] sm:$0xff] }
 0x27d   : > { %973 = vadd.xlane.f32.xlu0 %v972_v20  ;;  %v1728_v20 = vld [vmem:[%s3107_s6 + $0x40] sm:$0xff] }
 0x27e   : > { %2455 = vpow2.f32 %v970_v19  ;;  %v1729_v19 = vld [vmem:[%s3107_s6 + $0x48] sm:$0xff] }
 0x27f   : > { %v2444_v22 = vpop.eup %2443 }
 0x280   : > { %v2446_v23 = vpop.eup %2445  ;;  %2272 = vmatmul.mubr.msk.f32.vlgmr.msra.gmra.mxu1 %vm923_vm2, %v2444_v22  ;;  %v975_v24 = vsel %vm923_vm2, %v2444_v22, 0.0  ;;  %v1726_v22 = vld [vmem:[%s3107_s6 + $0x30] sm:$0xff] }
 0x281   : > { %2275 = vmatpush3.xpose.msk.msra.mxu1 %vm923_vm2, %v577_v52  ;;  %2276 = vmatprep.mubr.msk.f32.mxu1 %vm923_vm2, %v2446_v23  ;;  %v978_v25 = vsel %vm923_vm2, %v2446_v23, 0.0  ;;  %v1725_v23 = vld [vmem:[%s3107_s6 + $0x28] sm:$0xff] }
 0x282   : > { %2284 = vmatprep.subr.msk.mxu1 %vm923_vm2, %v587_v21  ;;  %979 = vadd.xlane.f32.xlu1 %v978_v25  ;;  %v1723_v25 = vld [vmem:[%s3107_s6 + $0x18] sm:$0xff] }
 0x283   : > { %v2448_v26 = vpop.eup %2447  ;;  %976 = vadd.xlane.f32.xlu0 %v975_v24  ;;  %v1724_v24 = vld [vmem:[%s3107_s6 + $0x20] sm:$0xff] }
 0x284   : > { %v2450_v27 = vpop.eup %2449  ;;  %2277 = vmatmul.mubr.msk.f32.vlgmr.msra.gmra.mxu1 %vm923_vm2, %v2448_v26  ;;  %v981_v28 = vsel %vm923_vm2, %v2448_v26, 0.0  ;;  %v1722_v26 = vld [vmem:[%s3107_s6 + $0x10] sm:$0xff] }
 0x285   : > { %2281 = vmatprep.mubr.msk.f32.mxu0 %vm923_vm2, %v2450_v27  ;;  %2285 = vmatpush3.xpose.msk.msra.mxu1 %vm923_vm2, %v587_v21  ;;  %v984_v29 = vsel %vm923_vm2, %v2450_v27, 0.0  ;;  %v1727_v21 = vld [vmem:[%s3107_s6 + $0x38] sm:$0xff]  ;;  %v1721_v27 = vld [vmem:[%s3107_s6 + $0x8] sm:$0xff] }
 0x286   : > { %982 = vadd.xlane.f32.xlu1 %v981_v28  ;;  %1475 = vmatprep.subr.mxu1 %v1351_v38  ;;  %v1720_v28 = vld [vmem:[%s3107_s6] sm:$0xff]  ;;  %v1826_v38 = vld [vmem:[#allocation7 + $0x30] sm:$0xff] }
 0x287   : > { %v2452_v30 = vpop.eup %2451  ;;  %985 = vadd.xlane.f32.xlu0 %v984_v29  ;;  %v1835_v29 = vld [vmem:[#allocation7 + $0x78] sm:$0xff] }
 0x288   : > { %v2454_v31 = vpop.eup %2453  ;;  %2282 = vmatmul.mubr.msk.f32.vlgmr.msra.gmra.mxu0 %vm923_vm2, %v2452_v30  ;;  %v987_v32 = vsel %vm923_vm2, %v2452_v30, 0.0  ;;  %v1834_v30 = vld [vmem:[#allocation7 + $0x70] sm:$0xff] }
 0x289   : > { %2286 = vmatprep.mubr.msk.f32.mxu1 %vm923_vm2, %v2454_v31  ;;  %v990_v33 = vsel %vm923_vm2, %v2454_v31, 0.0  ;;  %1393 = vmatpush1.msra.mxu0 %v1348_v37  ;;  %v1833_v31 = vld [vmem:[#allocation7 + $0x68] sm:$0xff]  ;;  %v1827_v37 = vld [vmem:[#allocation7 + $0x38] sm:$0xff] }
 0x28a   : > { %991 = vadd.xlane.f32.xlu1 %v990_v33  ;;  %1426 = vmatprep.mubr.f32.mxu0 %v2666_v39  ;;  %v1831_v33 = vld [vmem:[#allocation7 + $0x58] sm:$0xff] }
 0x28b   : > { %v2456_v34 = vpop.eup %2455  ;;  %988 = vadd.xlane.f32.xlu0 %v987_v32  ;;  %1558 = vmatprep.subr.mxu0 %v1353_v41  ;;  %v1832_v32 = vld [vmem:[#allocation7 + $0x60] sm:$0xff]  ;;  %v1702_v41 = vlaneseq }
 0x28c   : > { %2287 = vmatmul.mubr.msk.f32.vlgmr.msra.gmra.mxu1 %vm923_vm2, %v2456_v34  ;;  %v993_v35 = vsel %vm923_vm2, %v2456_v34, 0.0  ;;  %v1830_v34 = vld [vmem:[#allocation7 + $0x50] sm:$0xff] }
 0x28d   : > { %1509 = vmatprep.mubr.f32.mxu1 %v2666_v39  ;;  %1476 = vmatpush1.msra.mxu1 %v1350_v40  ;;  %v1824_v40 = vld [vmem:[#allocation7 + $0x20] sm:$0xff] }
 0x28e   : > { %994 = vadd.xlane.f32.xlu1 %v993_v35  ;;  %1641 = vmatprep.subr.mxu1 %v1355_v42  ;;  %v1829_v35 = vld [vmem:[#allocation7 + $0x48] sm:$0xff] }
 0x306   : > { %v974_v43 = vpop.xlane.xlu0 %973 }
 0x307   : > { %2457 = vrcp.f32 %v974_v43 }
 0x30b   : > { %v980_v44 = vpop.xlane.xlu1 %979 }
 0x30c   : > { %v977_v45 = vpop.xlane.xlu0 %976  ;;  %2459 = vrcp.f32 %v980_v44  ;;  %v1703_v44 = vshrl.u32 %v1702_v41, 7 }
 0x30d   : > { %2461 = vrcp.f32 %v977_v45 }
 0x30f   : > { %v983_v46 = vpop.xlane.xlu1 %982 }
 0x310   : > { %v986_v47 = vpop.xlane.xlu0 %985  ;;  %2463 = vrcp.f32 %v983_v46 }
 0x311   : > { %2465 = vrcp.f32 %v986_v47 }
 0x313   : > { %v992_v48 = vpop.xlane.xlu1 %991 }
 0x314   : > { %v989_v49 = vpop.xlane.xlu0 %988  ;;  %2467 = vrcp.f32 %v992_v48  ;;  %v2458_v51 = vpop.eup %2457 }
 0x315   : > { %2469 = vrcp.f32 %v989_v49  ;;  %v1704_v49 = vsub.s32 0, %v1703_v44 }
 0x317   : > { %v995_v52 = vpop.xlane.xlu1 %994 }
 0x318   : > { %2471 = vrcp.f32 %v995_v52  ;;  %v1700_v52 = vld [vmem:[%s3106_s5] sm:$0x3] }
 0x319   : > { %v2460_v58 = vpop.eup %2459 }
 0x31a   : > { %v2462_v59 = vpop.eup %2461 }
 0x31d   : > { %v2464_v1 = vpop.eup %2463 }
 0x31e   : > { %v2466_v2 = vpop.eup %2465 }
 0x321   : > { %v2468_v7 = vpop.eup %2467 }
 0x322   : > { %v2470_v9 = vpop.eup %2469 }
 0x325   : > { %v2472_v14 = vpop.eup %2471 }
 0x340   : > { %v2273_v50 = vpop.f32.mrf.mxu1 }
 0x341   : > { %v1341_v61 = vmul.f32 %v2462_v59, %v2273_v50  ;;  %v1705_v59 = vrot.slane %v1700_v52, %v1704_v49 }
 0x342   : > { %v1071_v53 = vpop.f32.mrf.mxu1 }
 0x343   : > { %v1340_v54 = vmul.f32 %v2458_v51, %v1071_v53 }
 0x344   : > { %v2278_v56 = vpop.f32.mrf.mxu1 }
 0x345   : > { %2134 = vmatmul.mubr.msk.f32.vlgmr.msra.gmra.mxu0 %vm598_vm1, %v1340_v54  ;;  %v1343_v4 = vmul.f32 %v2464_v1, %v2278_v56  ;;  %v1708_v54 = vsub.s32 1, %v1703_v44 }
 0x346   : > { %v1155_v60 = vpop.f32.mrf.mxu1  ;;  %1432 = vmatprep.mubr.f32.mxu0 %v2666_v39  ;;  %1559 = vmatpush1.msra.mxu0 %v1352_v55 }
 0x347   : > { %v1342_v62 = vmul.f32 %v2460_v58, %v1155_v60  ;;  %2289 = vmatprep.subr.mxu0 %v1735_v57  ;;  %v1709_v1 = vrot.slane %v1700_v52, %v1708_v54 }
 0x348   : > { %v2283_v0 = vpop.f32.mrf.mxu0 }
 0x349   : > { %2135 = vmatmul.mubr.msk.f32.gmra.mxu0 %vm598_vm1, %v1341_v61  ;;  %2136 = vmatmul.mubr.msk.f32.vlgmr.msra.gmra.mxu1 %vm598_vm1, %v1342_v62  ;;  %v1345_v11 = vmul.f32 %v2470_v9, %v2283_v0 }
 0x34a   : > { %v1239_v3 = vpop.f32.mrf.mxu0  ;;  %1642 = vmatpush1.msra.mxu1 %v1354_v63  ;;  %1515 = vmatprep.mubr.f32.mxu1 %v2666_v39 }
 0x34b   : > { %v1344_v5 = vmul.f32 %v2466_v2, %v1239_v3  ;;  %1592 = vmatprep.mubr.f32.mxu0 %v2666_v39  ;;  %2324 = vmatprep.subr.mxu1 %v1835_v29 }
 0x34c   : > { %v2288_v6 = vpop.f32.mrf.mxu1 }
 0x34d   : > { %2137 = vmatmul.mubr.msk.f32.gmra.mxu1 %vm598_vm1, %v1343_v4  ;;  %2138 = vmatmul.mubr.msk.f32.vlgmr.msra.gmra.mxu0 %vm598_vm1, %v1344_v5  ;;  %v1347_v16 = vmul.f32 %v2472_v14, %v2288_v6 }
 0x34e   : > { %v1323_v10 = vpop.f32.mrf.mxu1  ;;  %1598 = vmatprep.mubr.f32.mxu0 %v2666_v39  ;;  %1675 = vmatprep.mubr.f32.mxu1 %v2666_v39 }
 0x34f   : > { %v1346_v12 = vmul.f32 %v2468_v7, %v1323_v10  ;;  %2290 = vmatpush3.msra.mxu0 %v1735_v57 }
 0x350   : > { %2291 = vmatprep.subr.mxu0 %v1734_v8 }
 0x351   : > { %2139 = vmatmul.mubr.msk.f32.gmra.mxu0 %vm598_vm1, %v1345_v11  ;;  %2140 = vmatmul.mubr.msk.f32.vlgmr.msra.gmra.mxu1 %vm598_vm1, %v1346_v12 }
 0x352   : > { %1681 = vmatprep.mubr.f32.mxu1 %v2666_v39  ;;  %2292 = vmatpush3.msra.mxu0 %v1734_v8  ;;  %v1825_v39 = vld [vmem:[#allocation7 + $0x28] sm:$0xff] }
 0x353   : > { %2293 = vmatprep.subr.mxu0 %v1733_v13  ;;  %2325 = vmatpush3.msra.mxu1 %v1835_v29 }
 0x354   : > { %2294 = vmatpush3.msra.mxu0 %v1733_v13  ;;  %2326 = vmatprep.subr.mxu1 %v1834_v30 }
 0x355   : > { %2141 = vmatmul.mubr.msk.f32.gmra.mxu1 %vm598_vm1, %v1347_v16  ;;  %2295 = vmatprep.subr.mxu0 %v1732_v15 }
 0x356   : > { %2296 = vmatpush3.msra.mxu0 %v1732_v15  ;;  %2327 = vmatpush3.msra.mxu1 %v1834_v30 }
 0x357   : > { %2297 = vmatprep.subr.mxu0 %v1731_v17  ;;  %2328 = vmatprep.subr.mxu1 %v1833_v31 }
 0x358   : > { %2298 = vmatpush3.msra.mxu0 %v1731_v17  ;;  %2329 = vmatpush3.msra.mxu1 %v1833_v31 }
 0x359   : > { %2299 = vmatprep.subr.mxu0 %v1730_v18  ;;  %2330 = vmatprep.subr.mxu1 %v1832_v32 }
 0x35a   : > { %2300 = vmatpush3.msra.mxu0 %v1730_v18  ;;  %2331 = vmatpush3.msra.mxu1 %v1832_v32  ;;  %v1823_v18 = vld [vmem:[#allocation7 + $0x18] sm:$0xff] }
 0x35b   : > { %2301 = vmatprep.subr.mxu0 %v1729_v19  ;;  %2332 = vmatprep.subr.mxu1 %v1831_v33 }
 0x35c   : > { %2302 = vmatpush3.msra.mxu0 %v1729_v19  ;;  %2333 = vmatpush3.msra.mxu1 %v1831_v33  ;;  %v1822_v19 = vld [vmem:[#allocation7 + $0x10] sm:$0xff] }
 0x35d   : > { %2303 = vmatprep.subr.mxu0 %v1728_v20  ;;  %2334 = vmatprep.subr.mxu1 %v1830_v34 }
 0x35e   : > { %2304 = vmatpush3.msra.mxu0 %v1728_v20  ;;  %2335 = vmatpush3.msra.mxu1 %v1830_v34  ;;  %v1821_v20 = vld [vmem:[#allocation7 + $0x8] sm:$0xff] }
 0x35f   : > { %2305 = vmatprep.subr.mxu0 %v1727_v21  ;;  %2336 = vmatprep.subr.mxu1 %v1829_v35 }
 0x360   : > { %2306 = vmatpush3.msra.mxu0 %v1727_v21  ;;  %2337 = vmatpush3.msra.mxu1 %v1829_v35  ;;  %v1820_v21 = vld [vmem:[#allocation7] sm:$0xff] }
 0x361   : > { %2307 = vmatprep.subr.mxu0 %v1726_v22  ;;  %2338 = vmatprep.subr.mxu1 %v1828_v36 }
 0x362   : > { %2308 = vmatpush3.msra.mxu0 %v1726_v22  ;;  %2339 = vmatpush3.msra.mxu1 %v1828_v36  ;;  %v2142_v22 = vld [vmem:[%s3108_s7] ss:$0 sm:$0xff] }
 0x363   : > { %2309 = vmatprep.subr.mxu0 %v1725_v23  ;;  %2340 = vmatprep.subr.mxu1 %v1827_v37 }
 0x364   : > { %2310 = vmatpush3.msra.mxu0 %v1725_v23  ;;  %2341 = vmatpush3.msra.mxu1 %v1827_v37 }
 0x365   : > { %2311 = vmatprep.subr.mxu0 %v1724_v24  ;;  %2342 = vmatprep.subr.mxu1 %v1826_v38 }
 0x366   : > { %2312 = vmatpush3.msra.mxu0 %v1724_v24  ;;  %2343 = vmatpush3.msra.mxu1 %v1826_v38 }
 0x367   : > { %2313 = vmatprep.subr.mxu0 %v1723_v25  ;;  %2344 = vmatprep.subr.mxu1 %v1825_v39 }
 0x368   : > { %2314 = vmatpush3.msra.mxu0 %v1723_v25  ;;  %2345 = vmatpush3.msra.mxu1 %v1825_v39 }
 0x369   : > { %2315 = vmatprep.subr.mxu0 %v1722_v26  ;;  %2346 = vmatprep.subr.mxu1 %v1824_v40 }
 0x36a   : > { %2316 = vmatpush3.msra.mxu0 %v1722_v26  ;;  %2347 = vmatpush3.msra.mxu1 %v1824_v40 }
 0x36b   : > { %2317 = vmatprep.subr.mxu0 %v1721_v27  ;;  %2348 = vmatprep.subr.mxu1 %v1823_v18 }
 0x36c   : > { %2318 = vmatpush3.msra.mxu0 %v1721_v27  ;;  %2349 = vmatpush3.msra.mxu1 %v1823_v18 }
 0x36d   : > { %2319 = vmatprep.subr.mxu0 %v1720_v28  ;;  %2350 = vmatprep.subr.mxu1 %v1822_v19 }
 0x36e   : > { %2320 = vmatpush3.msra.mxu0 %v1720_v28  ;;  %2351 = vmatpush3.msra.mxu1 %v1822_v19 }
 0x36f   : > { %2352 = vmatprep.subr.mxu1 %v1821_v20 }
 0x370   : > { %2353 = vmatpush3.msra.mxu1 %v1821_v20 }
 0x371   : > { %2354 = vmatprep.subr.mxu1 %v1820_v21 }
 0x372   : > { %2355 = vmatpush3.msra.mxu1 %v1820_v21 }
 0x405   : > { %v1428_v42 = vpop.f32.mrf.mxu0 }
 0x407   : > { %v1430_v43 = vpop.f32.mrf.mxu0 }
 0x409   : > { %v1434_v45 = vpop.f32.mrf.mxu0  ;;  %v1511_v46 = vpop.f32.mrf.mxu1 }
 0x40a   : > { %v1688_v53 = vadd.f32 %v1511_v46, %v1428_v42 }
 0x40b   : > { %v1436_v47 = vpop.f32.mrf.mxu0  ;;  %v1513_v48 = vpop.f32.mrf.mxu1 }
 0x40c   : > { %v1691_v57 = vadd.f32 %v1513_v48, %v1430_v43 }
 0x40d   : > { %v1517_v50 = vpop.f32.mrf.mxu1  ;;  %v1594_v51 = vpop.f32.mrf.mxu0 }
 0x40e   : > { %v1689_v58 = vadd.f32 %v1688_v53, %v1594_v51  ;;  %v1694_v62 = vadd.f32 %v1517_v50, %v1434_v45 }
 0x40f   : > { %v1519_v55 = vpop.f32.mrf.mxu1  ;;  %v1596_v56 = vpop.f32.mrf.mxu0 }
 0x410   : > { %v1692_v63 = vadd.f32 %v1691_v57, %v1596_v56  ;;  %v1697_v4 = vadd.f32 %v1519_v55, %v1436_v47 }
 0x411   : > { %v1600_v60 = vpop.f32.mrf.mxu0  ;;  %v1677_v61 = vpop.f32.mrf.mxu1 }
 0x412   : > { %v1690_v0 = vadd.f32 %v1689_v58, %v1677_v61  ;;  %v1695_v5 = vadd.f32 %v1694_v62, %v1600_v60 }
 0x413   : > { %v1602_v2 = vpop.f32.mrf.mxu0  ;;  %v1679_v3 = vpop.f32.mrf.mxu1 }
 0x414   : > { %v1712_v6 = vadd.f32 %v1705_v59, %v1690_v0  ;;  %v1693_v7 = vadd.f32 %v1692_v63, %v1679_v3  ;;  %v1698_v10 = vadd.f32 %v1697_v4, %v1602_v2 }
 0x415   : > { %v1683_v8 = vpop.f32.mrf.mxu1 }
 0x416   : > { %v1718_v9 = vmax.f32 %v1712_v6, 0.0  ;;  %v1713_v11 = vadd.f32 %v1709_v1, %v1693_v7  ;;  %v1696_v12 = vadd.f32 %v1695_v5, %v1683_v8 }
 0x417   : > { %v1685_v13 = vpop.f32.mrf.mxu1 }
 0x418   : > { %1716 = vst [vmem:[%s3002_s12] sm:$0xff] %v1713_v11  ;;  %v1714_v14 = vadd.f32 %v1705_v59, %v1696_v12  ;;  %v1699_v15 = vadd.f32 %v1698_v10, %v1685_v13  ;;  %2321 = vmatprep.mubr.f32.mxu0 %v1718_v9 }
 0x41a   : > { %v1719_v16 = vmax.f32 %v1714_v14, 0.0  ;;  %v1715_v17 = vadd.f32 %v1709_v1, %v1699_v15 }
 0x41c   : > { %1717 = vst [vmem:[%s3002_s12 + $0x8] sm:$0xff] %v1715_v17  ;;  %2322 = vmatmul.mubr.f32.vlgmr.msra.gmra.mxu0 %v1719_v16  ;;  %s2563_s12 = sshll.u32 %s2667_s15, 4  ;;  %s2564_s12 = int_to_ptr.vmem [resolvable:$false] %s2563_s12 }
 0x41d   : > { %s2565_s22 = scalar_lea.vmem %s2564_s12, 512  ;;  %p2566_p6 = scmp.lt.s32.totalorder %s3010_s25, %s2564_s12 }
 0x41e   : > { %p2567_p9 = scmp.lt.s32.totalorder %s2565_s22, %s2559_s13 }
 0x420   : > { %p2568_p8 = por %p2567_p9, %p2566_p6 }
 0x422   : > { %p2569_p11 = pnand %p2568_p8, %p2562_p7 }
 0x4dc   : > { %v2323_v23 = vpop.f32.mrf.mxu0 }
 0x4dd   : > { %v1815_v24 = vadd.f32 %v2323_v23, %v2142_v22 }
 0x4de   : > { %v1809_v25 = vpop.f32.mrf.mxu0 }
 0x4df   : > { %v1810_v26 = vadd.f32 %v2142_v22, %v1809_v25  ;;  %v1819_v28 = vmax.f32 %v1815_v24, 0.0 }
 0x4e1   : > { %v1818_v27 = vmax.f32 %v1810_v26, 0.0 }
 0x4e3   : > { %2356 = vmatprep.mubr.f32.mxu1 %v1818_v27 }
 0x4e4   : > { %2357 = vmatmul.mubr.f32.vlgmr.msra.gmra.mxu1 %v1819_v28 }
 0x4e5   : > { %2572 = shalt.err (!%p2569_p11)
}
 0x4e6   : > { %s2573_s24 = scalar_lea.hbm %s3018_s26, 256  ;;  %s2577_s15 = scalar_lea.hbm %s3111_s10, 512 }
 0x4e7   : > { %p2574_p0 = scmp.ne.s32.totalorder %s3018_s26, %s2573_s24  ;;  %p2578_p3 = scmp.lt.s32.totalorder %s3018_s26, %s3111_s10 }
 0x4e8   : > { %p2579_p2 = scmp.lt.s32.totalorder %s2577_s15, %s2573_s24 }
 0x4e9   : > { %p2575_p1 = pnand %p2574_p0, %p2769_p5 }
 0x4ea   : > { %p2580_p4 = por %p2579_p2, %p2578_p3 }
 0x4eb   : > { %p2576_p13 = pneg %p2575_p1 }
 0x4ed   : > { %p2581_p10 = pnand %p2580_p4, %p2576_p13 }
 0x4ef   : > { %2584 = shalt.err (!%p2581_p10)
}
 0x4f0   : > { %s3119_s13 = smov 128   ;;  %s2669_s12 = smov 8   ;;  %v2143_v29 = vld [vmem:[%s3110_s9] ss:$0 sm:$0xff] }
 0x4f1   : > { %2371 = dma.vmem_to_hbm [thread:$0]  (%p2769_p5), %s3010_s25, 256, %s3018_s26, %s1933_s29, %s3119_s13, %s3119_s13, %s2669_s12  }
 0x4f2   : > { %s3131_s16 = sshll.u32 %s2997_s14, 4  ;;  %s3132_s26 = sshll.u32 %s2752_s21, 8 }
 0x4f3   : > { %s434_s25 = scalar_lea.vmem [#allocation9], %s3131_s16  ;;  %s3058_s23 = scalar_lea.hbm %s3112_s11, %s3132_s26 }
 0x4f4   : > { %s1967_s30 = sshll.u32 %s434_s25, 4  ;;  %s1938_s15 = scalar_lea.sflag [#allocation10], %s2997_s14  ;;  %s3051_s30 = int_to_ptr.vmem [resolvable:$true] %s1967_s30 }
 0x4f5   : > { %s2585_s22 = scalar_lea.vmem %s3051_s30, 256  ;;  %s2670_s19 = smov [#allocation9]  }
 0x4f6   : > { %p2586_p12 = scmp.ne.s32.totalorder %s3051_s30, %s2585_s22  ;;  %s2589_s16 = sshll.u32 %s2670_s19, 4  ;;  %s2590_s16 = int_to_ptr.vmem [resolvable:$false] %s2589_s16 }
 0x4f7   : > { %s2591_s13 = scalar_lea.vmem %s2590_s16, 512  ;;  %p2592_p9 = scmp.lt.s32.totalorder %s3051_s30, %s2590_s16 }
 0x4f8   : > { %p2587_p7 = pnand %p2586_p12, %p2769_p5  ;;  %p2593_p8 = scmp.lt.s32.totalorder %s2591_s13, %s2585_s22 }
 0x4fa   : > { %p2588_p6 = pneg %p2587_p7  ;;  %p2594_p11 = por %p2593_p8, %p2592_p9 }
 0x4fc   : > { %p2595_p0 = pnand %p2594_p11, %p2588_p6 }
 0x5a4   : > { %v2358_v30 = vpop.f32.mrf.mxu1 }
 0x5a5   : > { %v1915_v31 = vadd.f32 %v2358_v30, %v2143_v29 }
 0x5a6   : > { %v1909_v32 = vpop.f32.mrf.mxu1 }
 0x5a7   : > { %v2145_v33 = vmul.f32 -1.442695, %v1915_v31  ;;  %v1910_v34 = vadd.f32 %v2143_v29, %v1909_v32 }
 0x5a9   : > { %2473 = vpow2.f32 %v2145_v33  ;;  %v2144_v35 = vmul.f32 -1.442695, %v1910_v34 }
 0x5ab   : > { %2475 = vpow2.f32 %v2144_v35 }
 0x5b6   : > { %v2474_v36 = vpop.eup %2473 }
 0x5b7   : > { %v1925_v37 = vadd.f32 1.0, %v2474_v36 }
 0x5b8   : > { %v2476_v38 = vpop.eup %2475 }
 0x5b9   : > { %2477 = vrcp.f32 %v1925_v37  ;;  %v1924_v39 = vadd.f32 1.0, %v2476_v38 }
 0x5bb   : > { %2479 = vrcp.f32 %v1924_v39 }
 0x5c6   : > { %v2478_v40 = vpop.eup %2477 }
 0x5c7   : > { %1931 = vst [vmem:[%s434_s25 + $0x8] sm:$0xff] %v2478_v40 }
 0x5c8   : > { %v2480_v41 = vpop.eup %2479 }
 0x5c9   : > { %1930 = vst [vmem:[%s434_s25] sm:$0xff] %v2480_v41 }
 0x5ca   : > { %2598 = shalt.err (!%p2595_p0)
}
 0x5cb   : > { %s2599_s21 = scalar_lea.hbm %s3058_s23, 256  ;;  %s2603_s26 = scalar_lea.hbm %s3112_s11, 512 }
 0x5cc   : > { %p2600_p1 = scmp.ne.s32.totalorder %s3058_s23, %s2599_s21  ;;  %p2604_p2 = scmp.lt.s32.totalorder %s3058_s23, %s3112_s11 }
 0x5cd   : > { %p2605_p4 = scmp.lt.s32.totalorder %s2603_s26, %s2599_s21 }
 0x5ce   : > { %p2601_p13 = pnand %p2600_p1, %p2769_p5 }
 0x5cf   : > { %p2606_p10 = por %p2605_p4, %p2604_p2 }
 0x5d0   : > { %p2602_p3 = pneg %p2601_p13 }
 0x5d2   : > { %p2607_p12 = pnand %p2606_p10, %p2602_p3 }
 0x5d4   : > { %2610 = shalt.err (!%p2607_p12)
}
 0x5d5   : > { %s3133_s13 = smov 128  }
 0x5d6   : > { %2372 = dma.vmem_to_hbm [thread:$0]  (%p2769_p5), %s3051_s30, 256, %s3058_s23, %s1938_s15, %s3133_s13, %s3133_s13, %s2669_s12  }
 0x5d7 PF: > { %p2398_p7 = scmp.ge.s32.totalorder %s2657_s20, 2  ;;  %s1982_s22 = sand.u32 1, %s2645_s17  }
 0x5d8   : > { %p3134_p6 = scmp.ne.s32.totalorder %s3124_s28, 0  ;;  %s1983_s19 = scalar_lea.sflag [#allocation4], %s1982_s22 }
 0x5da   : > { %p2386_p9 = pnand %p2398_p7, %p3134_p6 }
 0x5dc   : > { %p2387_p8 = pneg %p2386_p9 }
 0x5de   : > { %2636 = dma.done.wait (%p2387_p8), %s1983_s19, 256  }
 0x5df   : > { %2638 = vsyncadd (%p2387_p8), %s1983_s19, 4294967040  ;;  %s1992_s16 = scalar_lea.sflag [#allocation10], %s1982_s22 }
 0x5e0   : > { %2640 = dma.done.wait (%p2387_p8), %s1992_s16, 256  }
 0x5e1   : > { %2642 = vsyncadd (%p2387_p8), %s1992_s16, 4294967040  ;;  %s3135_s20 = sld [smem:[#allocation16_spill]]  ;;  %s3138_s17 = smov %s2649_s18 }
 0x5e2   : > { %s3136_s27 = sld [smem:[#allocation15_spill]] }
 0x5e3   : > { %s3137_s19 = sld [smem:[#allocation17_spill]] }
 0x5e7   : > { %p27_p5 = scmp.ge.s32.totalorder %s3135_s20, 4  }
 0x5e8   : > { %s3139_s18 = smov %s3136_s27 }
 0x5e9   :  { %29 = sbr.rel (!%p27_p5) target bundleno = 7 (0x7), region = 125 }
 0x5ee   :  { %1997 = vsyncpa [#allocation3], 1 }
 0x5ef   :  { %1999 = vsyncpa [#allocation3 + $0x1], 1 }
 0x5f0   :  { %2000 = vsyncpa [#allocation6], 1 }
 0x5f1   :  { %2001 = vsyncpa [#allocation4], 1 }
 0x5f2   :  { %2003 = vsyncpa [#allocation4 + $0x1], 1 }
 0x5f3   :  { %2004 = vsyncpa [#allocation10], 1 }
 0x5f4   :  { %2006 = vsyncpa [#allocation10 + $0x1], 1 }

</bundles_post_ra>
